<compile_context>
chip_gen: v5e
topology: v5e:2x2
jax: 0.10.0
libtpu: 0.0.40
codegen_flags: <defaults>
</compile_context>

<pallas_src>
import functools
import math

import jax
import jax.numpy as jnp
from jax import lax
from jax.experimental import pallas as pl
from jax.experimental.pallas import tpu as pltpu


def _label_smoothing_kernel(x_ref, tgt_ref, out_ref, *, n_rows, padding_idx,
                            confidence, smooth_val, entropy_const,
                            use_mxu, check_rows):
    i = pl.program_id(0)
    x = x_ref[...]                                   # (tm, V), native dtype
    tgt = tgt_ref[...]                               # (tm, 1) int32 labels
    tm, v = x.shape

    # Row gate: target != padding_idx, and (only if a ragged tail exists)
    # row index in range.  (tm, 1) bool.
    gate = tgt != padding_idx
    if check_rows:
        row_ids = i * tm + lax.broadcasted_iota(jnp.int32, (tm, 1), 0)
        gate = jnp.logical_and(gate, row_ids < n_rows)

    # Gated x: zeroes padded rows AND any out-of-range tail-garbage rows
    # (`where` is NaN-safe against garbage in partial tail blocks).
    # Stays in the input dtype (bf16 path never upcasts the big tensors).
    y = jnp.where(gate, x, 0.0)                      # (tm, V)

    # x at the target column via a lane compare (no gather).  Gated-off rows
    # are already zero in y, so garbage/padding targets cannot contribute.
    cols = lax.broadcasted_iota(jnp.int32, (1, v), 1)
    sel = jnp.where(cols == tgt, y, 0.0)             # (tm, V)

    if use_mxu:
        # Offload the two row-reductions to the MXU: all-ones (8, tm) weights,
        # f32 accumulation; row 0 of each (8, V) result is the column sum.
        w = jnp.ones((8, tm), dtype=x.dtype)
        p_full = jnp.dot(w, y, preferred_element_type=jnp.float32)[0:1, :]
        p_sel = jnp.dot(w, sel, preferred_element_type=jnp.float32)[0:1, :]
    else:
        # Exact f32 sublane reductions on the VPU (f32 inputs).
        p_full = jnp.sum(y.astype(jnp.float32), axis=0, keepdims=True)
        p_sel = jnp.sum(sel.astype(jnp.float32), axis=0, keepdims=True)

    # The padding column gets true_dist = 0, so drop its smoothing share.
    p_full = jnp.where(cols == padding_idx, 0.0, p_full)      # (1, V)

    # Collapse to per-block scalars (all (1,1) f32, tiny).
    s_full = jnp.sum(p_full, axis=1, keepdims=True)
    s_sel = jnp.sum(p_sel, axis=1, keepdims=True)
    count = jnp.sum(gate.astype(jnp.float32), axis=0, keepdims=True)

    # Block partial of  sum( xlogy(td,td) - td*x ):
    #   entropy_const * (#non-padded rows)
    #   - (conf - sv) * sum_r x[r, tgt_r]  -  sv * sum_r sum_{c != pad} x[r, c]
    block_loss = (entropy_const * count
                  - (confidence - smooth_val) * s_sel
                  - smooth_val * s_full)
    out_ref[...] = block_loss.reshape(1, 1, 1)


def label_smoothing_loss(x, target, *, size, padding_idx, smoothing, tm=None):
    """x: (N, size) log-probs (f32 or bf16), target: (N,) int labels -> scalar loss."""
    n, v = x.shape
    assert v == size
    assert size > 2, "label smoothing divides by (size - 2); need size > 2"

    confidence = 1.0 - float(smoothing)
    smooth_val = float(smoothing) / (size - 2)

    # Entropy term xlogy(td, td) is constant per non-padded row — hoisted.
    def _xlogy(a):
        return a * math.log(a) if a > 0.0 else 0.0
    entropy_const = _xlogy(confidence) + (size - 2) * _xlogy(smooth_val)

    itemsize = jnp.dtype(x.dtype).itemsize
    row_align = max(8, 32 // itemsize)             # 8 rows for f32, 16 for bf16

    def _round_up(a, m):
        return ((a + m - 1) // m) * m

    n_rounded = _round_up(max(n, 1), row_align)

    if tm is None:
        # ~2 MiB of x per block: big enough to amortize per-step overhead,
        # small enough that elementwise intermediates stay comfortably inside
        # v7x's 64 MiB VMEM under a 32 MiB scoped limit.
        target_bytes = 2 * 1024 * 1024
        tm = max(row_align,
                 (target_bytes // (v * itemsize)) // row_align * row_align)
        tm = min(tm, n_rounded)
        if tm >= n_rounded and n > row_align:
            # Ensure >= 2 grid steps so both v7x TensorCores get work.
            tm = max(row_align, _round_up(-(-n // 2), row_align))
    else:
        tm = max(row_align, _round_up(int(tm), row_align))
        tm = min(tm, n_rounded)

    num_blocks = pl.cdiv(n, tm)
    use_mxu = (x.dtype == jnp.bfloat16)
    check_rows = (n % tm) != 0                     # ragged tail block exists

    tgt2 = target.reshape(n, 1).astype(jnp.int32)

    kernel = functools.partial(
        _label_smoothing_kernel, n_rows=n, padding_idx=int(padding_idx),
        confidence=confidence, smooth_val=smooth_val,
        entropy_const=entropy_const, use_mxu=use_mxu, check_rows=check_rows)

    partials = pl.pallas_call(
        kernel,
        out_shape=jax.ShapeDtypeStruct((num_blocks, 1, 1), jnp.float32),
        grid_spec=pltpu.PrefetchScalarGridSpec(
            num_scalar_prefetch=0,
            grid=(num_blocks,),
            in_specs=[
                pl.BlockSpec((tm, v), lambda i: (i, 0)),   # x tile (native dtype)
                pl.BlockSpec((tm, 1), lambda i: (i, 0)),   # target tile
            ],
            out_specs=pl.BlockSpec((1, 1, 1), lambda i: (i, 0, 0)),
        ),
        compiler_params=pltpu.CompilerParams(
            dimension_semantics=("parallel",),             # no cross-step state
            vmem_limit_bytes=32 * 1024 * 1024),
    )(x, tgt2)

    return jnp.sum(partials)


def _reference_loss(x, target, *, size, padding_idx, smoothing):
    n, v = x.shape
    x = x.astype(jnp.float32)
    confidence = 1.0 - smoothing
    smooth_val = smoothing / (size - 2)
    td = jnp.full((n, v), smooth_val, dtype=jnp.float32)
    td = td.at[jnp.arange(n), target].set(confidence)
    td = td.at[:, padding_idx].set(0.0)
    td = jnp.where((target == padding_idx)[:, None], 0.0, td)
    term = jnp.where(td > 0, td * jnp.log(jnp.where(td > 0, td, 1.0)), 0.0) - td * x
    return jnp.sum(term)


if __name__ == "__main__":
    SIZE = 128          # vocab (x.size(1))
    PADDING_IDX = 0
    SMOOTHING = 0.1

    key = jax.random.PRNGKey(0)

    # Case 1: small f32 case (16 tokens) — exercises the VPU path, 2 blocks.
    N = 16
    kx, kt, key = jax.random.split(key, 3)
    logits = jax.random.normal(kx, (N, SIZE), dtype=jnp.float32)
    x = jax.nn.log_softmax(logits, axis=-1)
    target = jax.random.randint(kt, (N,), 0, SIZE, dtype=jnp.int32)
    target = target.at[3].set(PADDING_IDX)                  # include a padded row

    loss = label_smoothing_loss(
        x, target, size=SIZE, padding_idx=PADDING_IDX, smoothing=SMOOTHING)
    loss = jax.block_until_ready(loss)
    ref = _reference_loss(
        x, target, size=SIZE, padding_idx=PADDING_IDX, smoothing=SMOOTHING)
    assert jnp.allclose(loss, ref, rtol=1e-5, atol=1e-4), (loss, ref)

    # Case 2: ragged f32 case, explicit tile -> 4 blocks with a partial tail.
    N2 = 200
    kx2, kt2, key = jax.random.split(key, 3)
    logits2 = jax.random.normal(kx2, (N2, SIZE), dtype=jnp.float32)
    x2 = jax.nn.log_softmax(logits2, axis=-1)
    target2 = jax.random.randint(kt2, (N2,), 0, SIZE, dtype=jnp.int32)
    target2 = target2.at[0].set(PADDING_IDX)

    loss2 = label_smoothing_loss(
        x2, target2, size=SIZE, padding_idx=PADDING_IDX, smoothing=SMOOTHING,
        tm=64)
    loss2 = jax.block_until_ready(loss2)
    ref2 = _reference_loss(
        x2, target2, size=SIZE, padding_idx=PADDING_IDX, smoothing=SMOOTHING)
    assert jnp.allclose(loss2, ref2, rtol=1e-5, atol=1e-4), (loss2, ref2)

    # Case 3: bf16 inputs — exercises the bf16-native MXU-reduction path,
    # auto tile, ragged tail.
    N3 = 200
    kx3, kt3, _ = jax.random.split(key, 3)
    logits3 = jax.random.normal(kx3, (N3, SIZE), dtype=jnp.float32)
    x3 = jax.nn.log_softmax(logits3, axis=-1).astype(jnp.bfloat16)
    target3 = jax.random.randint(kt3, (N3,), 0, SIZE, dtype=jnp.int32)
    target3 = target3.at[5].set(PADDING_IDX)

    loss3 = label_smoothing_loss(
        x3, target3, size=SIZE, padding_idx=PADDING_IDX, smoothing=SMOOTHING)
    loss3 = jax.block_until_ready(loss3)
    ref3 = _reference_loss(
        x3, target3, size=SIZE, padding_idx=PADDING_IDX, smoothing=SMOOTHING)
    assert jnp.allclose(loss3, ref3, rtol=5e-4, atol=1e-2), (loss3, ref3)

    print("KERNEL_OK")
</pallas_src>

<mosaic_0001>
module attributes {stable_mosaic.version = 11 : i64} {
  func.func @_label_smoothing_kernel(%arg0: i32, %arg1: memref<8x128xf32, #tpu.memory_space<vmem>>, %arg2: memref<8x1xi32, #tpu.memory_space<vmem>>, %arg3: memref<1x1x1xf32, #tpu.memory_space<vmem>>) attributes {dimension_semantics = [#tpu.dimension_semantics<parallel>], iteration_bounds = array<i64: 2>, scalar_prefetch = 0 : i64, scratch_operands = 0 : i64, tpu.core_type = #tpu.core_type<tc>, window_params = [{transform_indices = @transform_0, window_bounds = array<i64: 8, 128>}, {transform_indices = @transform_1, window_bounds = array<i64: 8, 1>}, {transform_indices = @transform_2, window_bounds = array<i64: 1, 1, 1>}]} {
    %c0 = arith.constant 0 : index
    %c0_0 = arith.constant 0 : index
    %0 = vector.load %arg1[%c0, %c0_0] : memref<8x128xf32, #tpu.memory_space<vmem>>, vector<8x128xf32>
    %c0_1 = arith.constant 0 : index
    %c0_2 = arith.constant 0 : index
    %1 = vector.load %arg2[%c0_1, %c0_2] : memref<8x1xi32, #tpu.memory_space<vmem>>, vector<8x1xi32>
    %c0_i32 = arith.constant 0 : i32
    %2 = vector.broadcast %c0_i32 : i32 to vector<8x1xi32>
    %3 = arith.cmpi ne, %1, %2 : vector<8x1xi32>
    %cst = arith.constant 0.000000e+00 : f32
    %4 = vector.shape_cast %3 : vector<8x1xi1> to vector<8x1xi1>
    %5 = vector.broadcast %4 : vector<8x1xi1> to vector<8x128xi1>
    %6 = vector.broadcast %cst : f32 to vector<8x128xf32>
    %7 = arith.select %5, %0, %6 : vector<8x128xi1>, vector<8x128xf32>
    %8 = tpu.iota {dimensions = array<i32: 1>} : vector<1x128xi32>
    %9 = vector.broadcast %8 : vector<1x128xi32> to vector<8x128xi32>
    %10 = vector.broadcast %1 : vector<8x1xi32> to vector<8x128xi32>
    %11 = arith.cmpi eq, %9, %10 : vector<8x128xi32>
    %cst_3 = arith.constant 0.000000e+00 : f32
    %12 = vector.broadcast %cst_3 : f32 to vector<8x128xf32>
    %13 = arith.select %11, %7, %12 : vector<8x128xi1>, vector<8x128xf32>
    %cst_4 = arith.constant dense<0.000000e+00> : vector<128xf32>
    %14 = vector.multi_reduction <add>, %7, %cst_4 [0] : vector<8x128xf32> to vector<128xf32>
    %15 = vector.shape_cast %14 : vector<128xf32> to vector<1x128xf32>
    %cst_5 = arith.constant dense<0.000000e+00> : vector<128xf32>
    %16 = vector.multi_reduction <add>, %13, %cst_5 [0] : vector<8x128xf32> to vector<128xf32>
    %17 = vector.shape_cast %16 : vector<128xf32> to vector<1x128xf32>
    %c0_i32_6 = arith.constant 0 : i32
    %18 = vector.broadcast %c0_i32_6 : i32 to vector<1x128xi32>
    %19 = arith.cmpi eq, %8, %18 : vector<1x128xi32>
    %cst_7 = arith.constant 0.000000e+00 : f32
    %20 = vector.broadcast %cst_7 : f32 to vector<1x128xf32>
    %21 = arith.select %19, %20, %15 : vector<1x128xi1>, vector<1x128xf32>
    %cst_8 = arith.constant dense<0.000000e+00> : vector<1xf32>
    %22 = vector.multi_reduction <add>, %21, %cst_8 [1] : vector<1x128xf32> to vector<1xf32>
    %23 = vector.shape_cast %22 : vector<1xf32> to vector<1x1xf32>
    %cst_9 = arith.constant dense<0.000000e+00> : vector<1xf32>
    %24 = vector.multi_reduction <add>, %17, %cst_9 [1] : vector<1x128xf32> to vector<1xf32>
    %25 = vector.shape_cast %24 : vector<1xf32> to vector<1x1xf32>
    %26 = arith.extui %3 : vector<8x1xi1> to vector<8x1xi32>
    %27 = arith.sitofp %26 : vector<8x1xi32> to vector<8x1xf32>
    %cst_10 = arith.constant dense<0.000000e+00> : vector<1xf32>
    %28 = vector.multi_reduction <add>, %27, %cst_10 [0] : vector<8x1xf32> to vector<1xf32>
    %29 = vector.shape_cast %28 : vector<1xf32> to vector<1x1xf32>
    %cst_11 = arith.constant -0.808711171 : f32
    %30 = vector.broadcast %cst_11 : f32 to vector<1x1xf32>
    %31 = arith.mulf %30, %29 : vector<1x1xf32>
    %cst_12 = arith.constant 0.89920634 : f32
    %32 = vector.broadcast %cst_12 : f32 to vector<1x1xf32>
    %33 = arith.mulf %32, %25 : vector<1x1xf32>
    %34 = arith.subf %31, %33 : vector<1x1xf32>
    %cst_13 = arith.constant 7.93650805E-4 : f32
    %35 = vector.broadcast %cst_13 : f32 to vector<1x1xf32>
    %36 = arith.mulf %35, %23 : vector<1x1xf32>
    %37 = arith.subf %34, %36 : vector<1x1xf32>
    %38 = vector.shape_cast %37 : vector<1x1xf32> to vector<1x1x1xf32>
    %c0_14 = arith.constant 0 : index
    %c0_15 = arith.constant 0 : index
    %c0_16 = arith.constant 0 : index
    %39 = vector.load %arg3[%c0_14, %c0_15, %c0_16] : memref<1x1x1xf32, #tpu.memory_space<vmem>>, vector<1x1x1xf32>
    tpu.vector_store %arg3[%c0_14, %c0_15, %c0_16], %38 {strides = array<i32>} : memref<1x1x1xf32, #tpu.memory_space<vmem>>, vector<1x1x1xf32>,
    return
  }
  func.func @transform_0(%arg0: i32) -> (i32, i32) {
    %c0_i32 = arith.constant 0 : i32
    %c0_i32_0 = arith.constant 0 : i32
    return %arg0, %c0_i32 : i32, i32
  }
  func.func @transform_1(%arg0: i32) -> (i32, i32) {
    %c0_i32 = arith.constant 0 : i32
    %c0_i32_0 = arith.constant 0 : i32
    return %arg0, %c0_i32 : i32, i32
  }
  func.func @transform_2(%arg0: i32) -> (i32, i32, i32) {
    %c0_i32 = arith.constant 0 : i32
    %c0_i32_0 = arith.constant 0 : i32
    %c0_i32_1 = arith.constant 0 : i32
    return %arg0, %c0_i32, %c0_i32_0 : i32, i32, i32
  }
}

</mosaic_0001>

<bundles_post_ra>
// kernel: tpu_custom_call.1
= control target key start
LH: loop header
LB: loop body
LE: loop exit
PB: predicated region body
PF: predicated region fallthrough
CT: control target
= control target key end

     0   :  { %s309_s9 = smov 0   ;;  %s335_s0 = inlined_call_operand.vmem [shape: f32[16,128], index: 0, kind: input, shape index: {}]   ;;  %s336_s1 = inlined_call_operand.vmem [shape: s32[16,1], index: 1, kind: input, shape index: {}]   ;;  %s337_s2 = inlined_call_operand.vmem [shape: f32[2,1,1], index: 2, kind: output, shape index: {}]  }
   0x1 LB: > { %s263_s10 = sadd.s32 4294967295, %s290_s9   ;;  %p267_p0 = scmp.ge.s32.totalorder %s290_s9, 1  ;;  %s290_s9 = sphi %s309_s9, %s12_s9  }
   0x2   : > { %p120_p1 = scmp.lt.s32.totalorder %s290_s9, 3 }
   0x4   : > { %p121_p2 = pnand %p267_p0, %p120_p1 }
   0x5   : > { %p143_p3 = scmp.lt.s32.totalorder (!%p121_p2), %s263_s10, 1 }
   0x6   : > { %124 = sbr.rel (%p121_p2) target bundleno = 283 (0x11b), region = 28 }
   0xb   : > { %v292_v0 = vmov 0   ;;  %s339_s10 = smov (!%p143_p3, %s263_s10), 1  ;;  %v163_v5 = vlaneseq  ;;  %v293_v23 = vmov 0.0   ;;  %vm189_vm4 = vcmask 7168  }
   0xc   : > { %283 = vset.pattern.permute.xlu0 %v292_v0  ;;  %s268_s11 = sshll.u32 %s339_s10, 3  ;;  %s153_s20 = scalar_lea.vmem %s337_s2, %s339_s10  ;;  %vm202_vm5 = vcmask 0  }
   0xd   : > { %s150_s14 = scalar_lea.vmem %s336_s1, %s268_s11  ;;  %s146_s17 = scalar_lea.vmem %s335_s0, %s268_s11  ;;  %v164_v7 = vand.u32 127, %v163_v5 }
   0xe   : > { %v155_v1 = vld [vmem:[%s150_s14] sm:$0xff] }
   0xf   : > { %vm156_vm0 = vcmp.ne.s32.totalorder %v155_v1, 0  ;;  %v154_v4 = vld [vmem:[%s146_s17] sm:$0xff]  ;;  %vm182_vm3 = vcmp.eq.s32.totalorder %v164_v7, 0 }
  0x10   : > { %v157_v2 = vsel %vm156_vm0, 1, %v292_v0  ;;  %v270_v24 = vsel %vm156_vm0, 1.0, %v293_v23 }
  0x11   : > { %159 = vperm.xlu0 %283, %v157_v2   ;;  %v190_v25 = vsel %vm189_vm4, %v270_v24, 0.0 }
  0x12   : > { %v191_v26 = vrot.slane %v190_v25, 4 }
  0x14   : > { %v192_v27 = vadd.f32 %v191_v26, %v190_v25 }
  0x16   : > { %v193_v28 = vrot.slane %v192_v27, 2 }
  0x18   : > { %v194_v29 = vadd.f32 %v193_v28, %v192_v27 }
  0x19   : > { %166 = vperm.xlu0 %283, %v155_v1  }
  0x1a   : > { %v195_v30 = vrot.slane %v194_v29, 1 }
  0x1c   : > { %v196_v32 = vadd.f32 %v195_v30, %v194_v29 }
  0x1e   : > { %v197_v33 = vmul.f32 -0.8087112, %v196_v32 }
  0x83   : > { %v160_v3 = vpop.permute.xlu0 %159 }
  0x84   : > { %vm161_vm1 = vcmp.eq.s32.totalorder %v160_v3, 1 }
  0x85   : > { %v162_v6 = vsel %vm161_vm1, %v154_v4, 0.0 }
  0x86   : > { %v170_v8 = vrot.slane %v162_v6, 4 }
  0x88   : > { %v171_v10 = vadd.f32 %v170_v8, %v162_v6 }
  0x8a   : > { %v172_v14 = vrot.slane %v171_v10, 2 }
  0x8b   : > { %v167_v9 = vpop.permute.xlu0 %166 }
  0x8c   : > { %vm168_vm2 = vcmp.eq.s32.totalorder %v164_v7, %v167_v9  ;;  %v173_v17 = vadd.f32 %v172_v14, %v171_v10 }
  0x8d   : > { %v169_v11 = vsel %vm168_vm2, %v162_v6, 0.0 }
  0x8e   : > { %v176_v12 = vrot.slane %v169_v11, 4  ;;  %v174_v20 = vrot.slane %v173_v17, 1 }
  0x90   : > { %v177_v13 = vadd.f32 %v176_v12, %v169_v11  ;;  %v175_v21 = vadd.f32 %v174_v20, %v173_v17 }
  0x92   : > { %v178_v15 = vrot.slane %v177_v13, 2  ;;  %v183_v22 = vsel %vm182_vm3, 0.0, %v175_v21 }
  0x94   : > { %v179_v16 = vadd.f32 %v178_v15, %v177_v13 }
  0x96   : > { %v180_v18 = vrot.slane %v179_v16, 1 }
  0x98   : > { %v181_v19 = vadd.f32 %v180_v18, %v179_v16 }
  0x9a   : > { %186 = vadd.xlane.f32.xlu1 %v181_v19 }
  0xa2   : > { %184 = vadd.xlane.f32.xlu1 %v183_v22 }
 0x10d   : > { %v187_v31 = vpop.xlane.xlu1 %186 }
 0x10e   : > { %v198_v34 = vmul.f32 0.89920634, %v187_v31 }
 0x110   : > { %v199_v36 = vsub.f32 %v197_v33, %v198_v34 }
 0x115   : > { %v185_v35 = vpop.xlane.xlu1 %184 }
 0x116   : > { %v200_v37 = vmul.f32 0.0007936508, %v185_v35 }
 0x118   : > { %v201_v38 = vsub.f32 %v199_v36, %v200_v37 }
 0x11a   : > { %203 = vst.msk [vmem:[%s153_s20] sm:$0x1] %vm202_vm5, %v201_v38 }
 0x11b PF: > { %s12_s9 = sadd.s32 1, %s290_s9  }
 0x11c   : > { %p9_p4 = scmp.ge.s32.totalorder %s12_s9, 4  }
 0x11e   :  { %11 = sbr.rel (!%p9_p4) target bundleno = 1 (0x1), region = 61 }

</bundles_post_ra>
